<compile_context>
chip_gen: v6e
topology: v6e:2x2x1
jax: 0.10.0
libtpu: 0.0.40
codegen_flags: <defaults>
</compile_context>

<pallas_src>
import jax
import jax.numpy as jnp
from jax.experimental import pallas as pl
from jax.experimental.pallas import tpu as pltpu


LEAKY_SLOPE = 0.01  # PyTorch nn.LeakyReLU default


def _paf_kernel(x_ref, w0_ref, b0_ref, w1_ref, b1_ref, w2_ref, b2_ref, o_ref):
    """Fused 3-layer pointwise-conv MLP for one (C, tile_l) column slab.

    x_ref / w*_ref are bf16 (MXU fast path); accumulation, bias add and the
    LeakyReLU are f32; activations are cast back to bf16 only at dot operands.
    """
    x = x_ref[...]  # (C_in, tile_l) bf16

    # conv0 + LeakyReLU : (C0, C_in) @ (C_in, tile_l) + (C0, 1)
    h = jnp.dot(w0_ref[...], x, preferred_element_type=jnp.float32) + b0_ref[...]
    h = jnp.maximum(h, LEAKY_SLOPE * h)

    # conv1 + LeakyReLU : (C1, C0) @ (C0, tile_l) + (C1, 1)
    h = jnp.dot(w1_ref[...], h.astype(jnp.bfloat16),
                preferred_element_type=jnp.float32) + b1_ref[...]
    h = jnp.maximum(h, LEAKY_SLOPE * h)

    # paf_out (no activation) : (C_out, C1) @ (C1, tile_l) + (C_out, 1)
    o = jnp.dot(w2_ref[...], h.astype(jnp.bfloat16),
                preferred_element_type=jnp.float32) + b2_ref[...]
    o_ref[...] = o.astype(o_ref.dtype)


def _tile_cap_and_vmem(requested_tile):
    """Generation-aware L-tile cap and scoped-VMEM limit."""
    kind = ""
    try:
        kind = jax.devices()[0].device_kind.lower()
    except Exception:  # pragma: no cover - defensive
        pass
    if "v6" in kind:
        # v6e: 128 MiB physical VMEM -> big tiles, generous scoped limit.
        cap, vmem = 32768, 64 << 20
    elif "v5" in kind:
        # v5e: 128 MiB physical but 16 MiB scoped default -> raise it.
        cap, vmem = 16384, 48 << 20
    else:
        # v7x (64 MiB physical VMEM) or unknown: stay conservative.
        cap, vmem = 16384, 28 << 20
    return min(requested_tile, cap), vmem


def paf_regressor_forward(triplet_feat_t, params, *, tile_l=16384):
    """Forward pass of LArMatchAffinityFieldRegressor.

    triplet_feat_t: (B, C_in, L) float32 (or bf16)  -- NCL, like Conv1d input
    params: dict with w0 (C0, C_in), b0 (C0,), w1 (C1, C0), b1 (C1,),
            w2 (C_out, C1), b2 (C_out,)   (PyTorch Conv1d weight[..., 0] layout)
    returns: (B, C_out, L) float32
    """
    B, C_in, L = triplet_feat_t.shape
    w0, b0 = params["w0"], params["b0"]
    w1, b1 = params["w1"], params["b1"]
    w2, b2 = params["w2"], params["b2"]
    C0 = w0.shape[0]
    C1 = w1.shape[0]
    C_out = w2.shape[0]

    tile_cap, vmem_limit = _tile_cap_and_vmem(tile_l)

    # Effective tile along L:
    #  - if L fits in one tile, use the full L (block dim == array dim is
    #    always legal, no padding / masking needed),
    #  - otherwise a multiple of 128 so the lane dim stays aligned.
    if L <= tile_cap:
        tile_l_eff = L
    else:
        tile_l_eff = max(128, (tile_cap // 128) * 128)
    n_l = pl.cdiv(L, tile_l_eff)

    # Megacore: avoid a degenerate (1, 1) grid when B == 1 and L is large
    # enough to split -- v7x has 2 TensorCores and a single grid point would
    # serialize everything onto one of them.
    if B * n_l < 2 and L >= 256:
        half = -(-L // 2)                      # ceil(L / 2)
        tile_l_eff = max(128, ((half + 127) // 128) * 128)
        n_l = pl.cdiv(L, tile_l_eff)

    grid = (B, n_l)

    # bf16 operands for the MXU; f32 accumulation happens inside the kernel.
    x_bf = triplet_feat_t.astype(jnp.bfloat16)
    w0_bf = w0.astype(jnp.bfloat16)
    w1_bf = w1.astype(jnp.bfloat16)
    w2_bf = w2.astype(jnp.bfloat16)
    # Biases stay f32 column vectors (C, 1) -> lane-broadcast inside kernel.
    b0_c = b0.reshape(C0, 1).astype(jnp.float32)
    b1_c = b1.reshape(C1, 1).astype(jnp.float32)
    b2_c = b2.reshape(C_out, 1).astype(jnp.float32)

    # Advisory cost hint for the XLA scheduler.
    flops = 2 * B * L * (C_in * C0 + C0 * C1 + C1 * C_out)
    param_bytes = 2 * (C0 * C_in + C1 * C0 + C_out * C1) + 4 * (C0 + C1 + C_out)
    bytes_accessed = B * L * (2 * C_in + 4 * C_out) + param_bytes
    cost = pl.CostEstimate(flops=flops, transcendentals=0,
                           bytes_accessed=bytes_accessed)

    out = pl.pallas_call(
        _paf_kernel,
        out_shape=jax.ShapeDtypeStruct((B, C_out, L), jnp.float32),
        grid_spec=pltpu.PrefetchScalarGridSpec(
            num_scalar_prefetch=0,
            grid=grid,
            in_specs=[
                # x: batch dim squeezed, (C_in, tile_l) slab per step.
                pl.BlockSpec((None, C_in, tile_l_eff), lambda b, l: (b, 0, l)),
                # Weights / biases: full arrays, constant index_map.
                pl.BlockSpec((C0, C_in), lambda b, l: (0, 0)),    # w0
                pl.BlockSpec((C0, 1), lambda b, l: (0, 0)),       # b0
                pl.BlockSpec((C1, C0), lambda b, l: (0, 0)),      # w1
                pl.BlockSpec((C1, 1), lambda b, l: (0, 0)),       # b1
                pl.BlockSpec((C_out, C1), lambda b, l: (0, 0)),   # w2
                pl.BlockSpec((C_out, 1), lambda b, l: (0, 0)),    # b2
            ],
            out_specs=pl.BlockSpec((None, C_out, tile_l_eff),
                                   lambda b, l: (b, 0, l)),
        ),
        compiler_params=pltpu.CompilerParams(
            dimension_semantics=("parallel", "parallel"),
            vmem_limit_bytes=vmem_limit,
        ),
        cost_estimate=cost,
    )(x_bf, w0_bf, b0_c, w1_bf, b1_c, w2_bf, b2_c)

    return out


def init_params(key, input_features=16, layer_nfeatures=(64, 64),
                ninput_planes=3, output_dim=3):
    """Deterministic init mimicking PyTorch Conv1d default (U(-1/sqrt(fan_in), ...))."""
    c_in = ninput_planes * input_features
    c0, c1 = layer_nfeatures[0], layer_nfeatures[-1]

    def uinit(k, shape, fan_in):
        bound = 1.0 / jnp.sqrt(jnp.float32(fan_in))
        return jax.random.uniform(k, shape, jnp.float32, -bound, bound)

    ks = jax.random.split(key, 6)
    return {
        "w0": uinit(ks[0], (c0, c_in), c_in),
        "b0": uinit(ks[1], (c0,), c_in),
        "w1": uinit(ks[2], (c1, c0), c0),
        "b1": uinit(ks[3], (c1,), c0),
        "w2": uinit(ks[4], (output_dim, c1), c1),
        "b2": uinit(ks[5], (output_dim,), c1),
    }


def _reference_forward(x, params, *, bf16_operands=False):
    """Pure-JAX reference. With bf16_operands=True it mirrors the kernel's
    mixed precision (bf16 dot operands, f32 accumulation / activations)."""
    def maybe_bf16(a):
        return a.astype(jnp.bfloat16) if bf16_operands else a

    def pw_conv(h, w, b):  # h: (B, C_in, L), w: (C_out, C_in), b: (C_out,)
        y = jnp.einsum("oc,bcl->bol", maybe_bf16(w), maybe_bf16(h),
                       preferred_element_type=jnp.float32)
        return y + b[None, :, None]

    h = pw_conv(x, params["w0"], params["b0"])
    h = jnp.maximum(h, LEAKY_SLOPE * h)
    h = pw_conv(h, params["w1"], params["b1"])
    h = jnp.maximum(h, LEAKY_SLOPE * h)
    return pw_conv(h, params["w2"], params["b2"])


if __name__ == "__main__":
    key = jax.random.PRNGKey(0)
    k_param, k_x = jax.random.split(key)

    # Small shapes consistent with the module: 3 planes * 16 feats = 48 input
    # channels, batch=2, sequence length (n triplets) = 128.
    B, L = 2, 128
    input_features, ninput_planes = 16, 3
    params = init_params(k_param, input_features=input_features,
                         layer_nfeatures=(64, 64),
                         ninput_planes=ninput_planes, output_dim=3)

    x = jax.random.normal(k_x, (B, ninput_planes * input_features, L),
                          dtype=jnp.float32)

    out = paf_regressor_forward(x, params)
    out = jax.block_until_ready(out)
    assert out.shape == (B, 3, L), out.shape

    # Tight check against a reference that uses the same bf16 dot operands.
    ref_bf16 = _reference_forward(x, params, bf16_operands=True)
    assert jnp.allclose(out, ref_bf16, atol=1e-3, rtol=1e-3), \
        float(jnp.max(jnp.abs(out - ref_bf16)))

    # Looser check against the full-f32 PyTorch-equivalent reference
    # (bf16 operands + f32 accumulation keep the error small but not 1e-4).
    ref_f32 = _reference_forward(x, params, bf16_operands=False)
    assert jnp.allclose(out, ref_f32, atol=5e-2, rtol=5e-2), \
        float(jnp.max(jnp.abs(out - ref_f32)))

    print("KERNEL_OK")
</pallas_src>

<mosaic_0001>
module attributes {stable_mosaic.version = 11 : i64} {
  func.func @_paf_kernel(%arg0: i32, %arg1: i32, %arg2: memref<1x48x128xbf16, #tpu.memory_space<vmem>>, %arg3: memref<64x48xbf16, #tpu.memory_space<vmem>>, %arg4: memref<64x1xf32, #tpu.memory_space<vmem>>, %arg5: memref<64x64xbf16, #tpu.memory_space<vmem>>, %arg6: memref<64x1xf32, #tpu.memory_space<vmem>>, %arg7: memref<3x64xbf16, #tpu.memory_space<vmem>>, %arg8: memref<3x1xf32, #tpu.memory_space<vmem>>, %arg9: memref<1x3x128xf32, #tpu.memory_space<vmem>>) attributes {dimension_semantics = [#tpu.dimension_semantics<parallel>, #tpu.dimension_semantics<parallel>], iteration_bounds = array<i64: 2, 1>, scalar_prefetch = 0 : i64, scratch_operands = 0 : i64, tpu.core_type = #tpu.core_type<tc>, window_params = [{transform_indices = @transform_0, window_bounds = array<i64: 1, 48, 128>}, {pipeline_mode = #tpu.pipeline_mode<synchronous>, transform_indices = @transform_1, window_bounds = array<i64: 64, 48>}, {pipeline_mode = #tpu.pipeline_mode<synchronous>, transform_indices = @transform_2, window_bounds = array<i64: 64, 1>}, {pipeline_mode = #tpu.pipeline_mode<synchronous>, transform_indices = @transform_3, window_bounds = array<i64: 64, 64>}, {pipeline_mode = #tpu.pipeline_mode<synchronous>, transform_indices = @transform_4, window_bounds = array<i64: 64, 1>}, {pipeline_mode = #tpu.pipeline_mode<synchronous>, transform_indices = @transform_5, window_bounds = array<i64: 3, 64>}, {pipeline_mode = #tpu.pipeline_mode<synchronous>, transform_indices = @transform_6, window_bounds = array<i64: 3, 1>}, {transform_indices = @transform_7, window_bounds = array<i64: 1, 3, 128>}]} {
    %c0 = arith.constant 0 : index
    %c0_0 = arith.constant 0 : index
    %c0_1 = arith.constant 0 : index
    %0 = vector.load %arg2[%c0, %c0_0, %c0_1] : memref<1x48x128xbf16, #tpu.memory_space<vmem>>, vector<1x48x128xbf16>
    %1 = vector.shape_cast %0 : vector<1x48x128xbf16> to vector<48x128xbf16>
    %c0_2 = arith.constant 0 : index
    %c0_3 = arith.constant 0 : index
    %2 = vector.load %arg3[%c0_2, %c0_3] : memref<64x48xbf16, #tpu.memory_space<vmem>>, vector<64x48xbf16>
    %cst = arith.constant dense<0.000000e+00> : vector<64x128xf32>
    %3 = tpu.matmul %2, %1, %cst {dimension_numbers = #tpu.dot_dimension_numbers<[1], [0], [0], [1], [0, 0, 1, 1], [], []>} : vector<64x48xbf16>, vector<48x128xbf16>, vector<64x128xf32> -> vector<64x128xf32>
    %c0_4 = arith.constant 0 : index
    %c0_5 = arith.constant 0 : index
    %4 = vector.load %arg4[%c0_4, %c0_5] : memref<64x1xf32, #tpu.memory_space<vmem>>, vector<64x1xf32>
    %5 = vector.broadcast %4 : vector<64x1xf32> to vector<64x128xf32>
    %6 = arith.addf %3, %5 : vector<64x128xf32>
    %cst_6 = arith.constant 0.00999999977 : f32
    %7 = vector.broadcast %cst_6 : f32 to vector<64x128xf32>
    %8 = arith.mulf %7, %6 : vector<64x128xf32>
    %9 = arith.maximumf %6, %8 : vector<64x128xf32>
    %c0_7 = arith.constant 0 : index
    %c0_8 = arith.constant 0 : index
    %10 = vector.load %arg5[%c0_7, %c0_8] : memref<64x64xbf16, #tpu.memory_space<vmem>>, vector<64x64xbf16>
    %11 = arith.truncf %9 : vector<64x128xf32> to vector<64x128xbf16>
    %cst_9 = arith.constant dense<0.000000e+00> : vector<64x128xf32>
    %12 = tpu.matmul %10, %11, %cst_9 {dimension_numbers = #tpu.dot_dimension_numbers<[1], [0], [0], [1], [0, 0, 1, 1], [], []>} : vector<64x64xbf16>, vector<64x128xbf16>, vector<64x128xf32> -> vector<64x128xf32>
    %c0_10 = arith.constant 0 : index
    %c0_11 = arith.constant 0 : index
    %13 = vector.load %arg6[%c0_10, %c0_11] : memref<64x1xf32, #tpu.memory_space<vmem>>, vector<64x1xf32>
    %14 = vector.broadcast %13 : vector<64x1xf32> to vector<64x128xf32>
    %15 = arith.addf %12, %14 : vector<64x128xf32>
    %cst_12 = arith.constant 0.00999999977 : f32
    %16 = vector.broadcast %cst_12 : f32 to vector<64x128xf32>
    %17 = arith.mulf %16, %15 : vector<64x128xf32>
    %18 = arith.maximumf %15, %17 : vector<64x128xf32>
    %c0_13 = arith.constant 0 : index
    %c0_14 = arith.constant 0 : index
    %19 = vector.load %arg7[%c0_13, %c0_14] : memref<3x64xbf16, #tpu.memory_space<vmem>>, vector<3x64xbf16>
    %20 = arith.truncf %18 : vector<64x128xf32> to vector<64x128xbf16>
    %cst_15 = arith.constant dense<0.000000e+00> : vector<3x128xf32>
    %21 = tpu.matmul %19, %20, %cst_15 {dimension_numbers = #tpu.dot_dimension_numbers<[1], [0], [0], [1], [0, 0, 1, 1], [], []>} : vector<3x64xbf16>, vector<64x128xbf16>, vector<3x128xf32> -> vector<3x128xf32>
    %c0_16 = arith.constant 0 : index
    %c0_17 = arith.constant 0 : index
    %22 = vector.load %arg8[%c0_16, %c0_17] : memref<3x1xf32, #tpu.memory_space<vmem>>, vector<3x1xf32>
    %23 = vector.broadcast %22 : vector<3x1xf32> to vector<3x128xf32>
    %24 = arith.addf %21, %23 : vector<3x128xf32>
    %c0_18 = arith.constant 0 : index
    %c0_19 = arith.constant 0 : index
    %c0_20 = arith.constant 0 : index
    %25 = vector.load %arg9[%c0_18, %c0_19, %c0_20] : memref<1x3x128xf32, #tpu.memory_space<vmem>>, vector<1x3x128xf32>
    %26 = vector.shape_cast %25 : vector<1x3x128xf32> to vector<3x128xf32>
    %27 = vector.shape_cast %24 : vector<3x128xf32> to vector<1x3x128xf32>
    tpu.vector_store %arg9[%c0_18, %c0_19, %c0_20], %27 {strides = array<i32>} : memref<1x3x128xf32, #tpu.memory_space<vmem>>, vector<1x3x128xf32>,
    return
  }
  func.func @transform_0(%arg0: i32, %arg1: i32) -> (i32, i32, i32) {
    %c0_i32 = arith.constant 0 : i32
    %c0_i32_0 = arith.constant 0 : i32
    return %arg0, %c0_i32, %arg1 : i32, i32, i32
  }
  func.func @transform_1(%arg0: i32, %arg1: i32) -> (i32, i32) {
    %c0_i32 = arith.constant 0 : i32
    %c0_i32_0 = arith.constant 0 : i32
    %c0_i32_1 = arith.constant 0 : i32
    return %c0_i32, %c0_i32_0 : i32, i32
  }
  func.func @transform_2(%arg0: i32, %arg1: i32) -> (i32, i32) {
    %c0_i32 = arith.constant 0 : i32
    %c0_i32_0 = arith.constant 0 : i32
    %c0_i32_1 = arith.constant 0 : i32
    return %c0_i32, %c0_i32_0 : i32, i32
  }
  func.func @transform_3(%arg0: i32, %arg1: i32) -> (i32, i32) {
    %c0_i32 = arith.constant 0 : i32
    %c0_i32_0 = arith.constant 0 : i32
    %c0_i32_1 = arith.constant 0 : i32
    return %c0_i32, %c0_i32_0 : i32, i32
  }
  func.func @transform_4(%arg0: i32, %arg1: i32) -> (i32, i32) {
    %c0_i32 = arith.constant 0 : i32
    %c0_i32_0 = arith.constant 0 : i32
    %c0_i32_1 = arith.constant 0 : i32
    return %c0_i32, %c0_i32_0 : i32, i32
  }
  func.func @transform_5(%arg0: i32, %arg1: i32) -> (i32, i32) {
    %c0_i32 = arith.constant 0 : i32
    %c0_i32_0 = arith.constant 0 : i32
    %c0_i32_1 = arith.constant 0 : i32
    return %c0_i32, %c0_i32_0 : i32, i32
  }
  func.func @transform_6(%arg0: i32, %arg1: i32) -> (i32, i32) {
    %c0_i32 = arith.constant 0 : i32
    %c0_i32_0 = arith.constant 0 : i32
    %c0_i32_1 = arith.constant 0 : i32
    return %c0_i32, %c0_i32_0 : i32, i32
  }
  func.func @transform_7(%arg0: i32, %arg1: i32) -> (i32, i32, i32) {
    %c0_i32 = arith.constant 0 : i32
    %c0_i32_0 = arith.constant 0 : i32
    return %arg0, %c0_i32, %arg1 : i32, i32, i32
  }
}

</mosaic_0001>

<bundles_post_ra>
// kernel: tpu_custom_call.1
= control target key start
LH: loop header
LB: loop body
LE: loop exit
PB: predicated region body
PF: predicated region fallthrough
CT: control target
= control target key end

     0   :  { %s1008_s24 = smov 0   ;;  %s1010_s25 = smov 0   ;;  %s1132_s0 = inlined_call_operand.vmem [shape: bf16[2,48,128], index: 0, kind: input, shape index: {}]   ;;  %s1133_s1 = inlined_call_operand.vmem [shape: bf16[64,48], index: 1, kind: input, shape index: {}]   ;;  %s1134_s2 = inlined_call_operand.vmem [shape: f32[64,1], index: 2, kind: input, shape index: {}]   ;;  %s1135_s3 = inlined_call_operand.vmem [shape: bf16[64,64], index: 3, kind: input, shape index: {}]   ;;  %s1136_s4 = inlined_call_operand.vmem [shape: f32[64,1], index: 4, kind: input, shape index: {}]   ;;  %s1137_s5 = inlined_call_operand.vmem [shape: bf16[3,64], index: 5, kind: input, shape index: {}]   ;;  %s1138_s6 = inlined_call_operand.vmem [shape: f32[3,1], index: 6, kind: input, shape index: {}]   ;;  %s1139_s7 = inlined_call_operand.vmem [shape: f32[2,3,128], index: 7, kind: output, shape index: {}]  }
   0x1   :  { %s1012_s26 = smov 0  }
   0x2 LB: > { %s29_s27 = sadd.s32 1, %s959_s25  ;;  %p813_p0 = scmp.ge.s32.totalorder %s963_s26, 1  ;;  %s963_s26 = sphi %s1012_s26, %s17_s26   ;;  %s959_s25 = sphi %s1010_s25, %s1141_s25   ;;  %s955_s24 = sphi %s1008_s24, %s1140_s24  }
   0x3   : > { %p31_p1 = scmp.ge.s32.totalorder %s29_s27, 2  ;;  %p256_p2 = scmp.lt.s32.totalorder %s963_s26, 3 }
   0x5   : > { %s1143_s27 = smov (%p31_p1, %s29_s27), 0  ;;  %p257_p3 = pnand %p813_p0, %p256_p2 }
   0x6   : > { %p293_p4 = scmp.lt.s32.totalorder (!%p257_p3), %s955_s24, 1 }
   0x7   : > { %260 = sbr.rel (%p257_p3) target bundleno = 685 (0x2ad), region = 48 }
   0xc   : > { %v933_v0 = vld [vmem:[%s1133_s1] sm:$0xff]   ;;  %vm409_vm0 = vcmask 392192   ;;  %s1145_s24 = smov (!%p293_p4, %s955_s24), 1  ;;  %v965_v1 = vmov 0   ;;  %v329_v2 = vld [vmem:[%s1134_s2 + $0x30] sm:$0xff]  ;;  %v330_v4 = vld [vmem:[%s1134_s2 + $0x38] sm:$0xff] }
   0xd   : > { %864 = vmatprep.mubr.msk.bf16.mxu0 %vm409_vm0, %v933_v0  ;;  %s900_s30 = smul.u32 24, %s1145_s24  ;;  %928 = vset.pattern.permute.xlu0 %v965_v1  ;;  %v327_v3 = vld [vmem:[%s1134_s2 + $0x20] sm:$0xff]  ;;  %v328_v5 = vld [vmem:[%s1134_s2 + $0x28] sm:$0xff]  ;;  %v325_v8 = vld [vmem:[%s1134_s2 + $0x10] sm:$0xff]  ;;  %vm583_vm1 = vcmask 523264   ;;  %vm967_vm2 = vmmov 0  }
   0xe   : > { %929 = vset.pattern.permute.xlu1 %v965_v1  ;;  %363 = vperm.xlu0 %928, %v329_v2   ;;  %v326_v10 = vld [vmem:[%s1134_s2 + $0x18] sm:$0xff]  ;;  %v323_v11 = vld [vmem:[%s1134_s2] sm:$0xff]  ;;  %v324_v12 = vld [vmem:[%s1134_s2 + $0x8] sm:$0xff]  ;;  %s815_s23 = sshll.u32 %s1145_s24, 2 }
   0xf   : > { %353 = vperm.xlu1 %929, %v327_v3   ;;  %s300_s14 = scalar_lea.vmem %s1132_s0, %s900_s30  ;;  %v934_v13 = vld [vmem:[%s1133_s1 + $0x8] sm:$0xff]   ;;  %v935_v14 = vld [vmem:[%s1133_s1 + $0x10] sm:$0xff]   ;;  %v522_v16 = vld [vmem:[%s1136_s4 + $0x38] sm:$0xff]  ;;  %s307_s30 = scalar_lea.vmem %s1139_s7, %s815_s23 }
  0x10   : > { %v930_v6 = vld [vmem:[%s300_s14 + $0x10] sm:$0xff]   ;;  %v931_v7 = vld [vmem:[%s300_s14 + $0x8] sm:$0xff]   ;;  %v932_v9 = vld [vmem:[%s300_s14] sm:$0xff]  }
  0x11   : > { %858 = vmatprep.subr.bf16.mxu0 %v930_v6  ;;  %v521_v15 = vld [vmem:[%s1136_s4 + $0x30] sm:$0xff]  ;;  %v519_v17 = vld [vmem:[%s1136_s4 + $0x20] sm:$0xff]  ;;  %v520_v18 = vld [vmem:[%s1136_s4 + $0x28] sm:$0xff] }
  0x12   : > { %368 = vperm.xlu0 %928, %v330_v4   ;;  %859 = vmatpush3.bf16.msra.mxu0 %v930_v6  ;;  %v936_v19 = vld [vmem:[%s1133_s1 + $0x18] sm:$0xff]   ;;  %v517_v20 = vld [vmem:[%s1136_s4 + $0x10] sm:$0xff]  ;;  %v515_v22 = vld [vmem:[%s1136_s4] sm:$0xff] }
  0x13   : > { %358 = vperm.xlu1 %929, %v328_v5   ;;  %860 = vmatprep.subr.bf16.mxu0 %v931_v7  ;;  %v518_v21 = vld [vmem:[%s1136_s4 + $0x18] sm:$0xff]  ;;  %v516_v23 = vld [vmem:[%s1136_s4 + $0x8] sm:$0xff]  ;;  %v682_v24 = vld [vmem:[%s1138_s6] sm:$0x7] }
  0x14   : > { %v937_v25 = vld [vmem:[%s1135_s3] sm:$0xff]   ;;  %v938_v6 = vld [vmem:[%s1135_s3 + $0x8] sm:$0xff]  }
  0x15   : > { %880 = vmatprep.mubr.msk.bf16.mxu1 %vm583_vm1, %v937_v25 }
  0x16   : > { %343 = vperm.xlu0 %928, %v325_v8   ;;  %861 = vmatpush3.bf16.msra.mxu0 %v931_v7  ;;  %v939_v7 = vld [vmem:[%s1135_s3 + $0x10] sm:$0xff]   ;;  %v940_v8 = vld [vmem:[%s1135_s3 + $0x18] sm:$0xff]  }
  0x17   : > { %348 = vperm.xlu1 %929, %v326_v10   ;;  %862 = vmatprep.subr.bf16.mxu0 %v932_v9 }
  0x1a   : > { %333 = vperm.xlu0 %928, %v323_v11   ;;  %863 = vmatpush3.bf16.msra.mxu0 %v932_v9  ;;  %v966_v9 = vmov 0.0  }
  0x1b   : > { %338 = vperm.xlu1 %929, %v324_v12   ;;  %888 = vmatprep.subr.bf16.mxu0 %v966_v9 }
  0x1d   : > { %865 = vmatmul.mubr.msk.bf16.vlgmr.msra.gmra.mxu0 %vm409_vm0, %v934_v13 }
  0x1e   : > { %555 = vperm.xlu0 %928, %v521_v15   ;;  %868 = vmatprep.mubr.msk.bf16.mxu0 %vm409_vm0, %v935_v14 }
  0x1f   : > { %560 = vperm.xlu1 %929, %v522_v16  }
  0x22   : > { %545 = vperm.xlu0 %928, %v519_v17  }
  0x23   : > { %550 = vperm.xlu1 %929, %v520_v18  }
  0x25   : > { %869 = vmatmul.mubr.msk.bf16.gmra.mxu0 %vm409_vm0, %v936_v19 }
  0x26   : > { %535 = vperm.xlu0 %928, %v517_v20   ;;  %896 = vmatprep.mubr.msk.bf16.mxu0 %vm967_vm2, %v966_v9 }
  0x27   : > { %540 = vperm.xlu1 %929, %v518_v21  }
  0x2a   : > { %525 = vperm.xlu0 %928, %v515_v22  }
  0x2b   : > { %530 = vperm.xlu1 %929, %v516_v23  }
  0x2e   : > { %685 = vperm.xlu0 %928, %v682_v24  }
  0x89   : > { %v364_v27 = vpop.permute.xlu0 %363 }
  0x8a   : > { %v354_v26 = vpop.permute.xlu1 %353 }
  0x8d   : > { %v369_v32 = vpop.permute.xlu0 %368 }
  0x8e   : > { %v359_v30 = vpop.permute.xlu1 %358 }
  0x91   : > { %v344_v39 = vpop.permute.xlu0 %343 }
  0x92   : > { %v349_v36 = vpop.permute.xlu1 %348 }
  0x95   : > { %v334_v55 = vpop.permute.xlu0 %333 }
  0x96   : > { %v339_v49 = vpop.permute.xlu1 %338 }
  0x99   : > { %v556_v12 = vpop.permute.xlu0 %555 }
  0x9a   : > { %v561_v10 = vpop.permute.xlu1 %560 }
  0x9d   : > { %v546_v17 = vpop.permute.xlu0 %545 }
  0x9e   : > { %v551_v15 = vpop.permute.xlu1 %550 }
  0xa2   : > { %v541_v21 = vpop.permute.xlu1 %540 }
  0xdd   : > { %v866_v28 = vpop.f32.mrf.mxu0 }
  0xde   : > { %v465_v44 = vadd.f32 %v866_v28, %v344_v39 }
  0xdf   : > { %v456_v29 = vpop.f32.mrf.mxu0 }
  0xe0   : > { %v489_v56 = vmul.f32 0.01, %v465_v44  ;;  %v457_v57 = vadd.f32 %v456_v29, %v334_v55 }
  0xe1   : > { %v867_v31 = vpop.f32.mrf.mxu0 }
  0xe2   : > { %v468_v40 = vadd.f32 %v867_v31, %v349_v36  ;;  %v497_v0 = vmax.f32 %v465_v44, %v489_v56  ;;  %v487_v1 = vmul.f32 0.01, %v457_v57  ;;  %v531_v36 = vpop.permute.xlu1 %530 }
  0xe3   : > { %v459_v33 = vpop.f32.mrf.mxu0 }
  0xe4   : > { %v490_v50 = vmul.f32 0.01, %v468_v40  ;;  %v460_v51 = vadd.f32 %v459_v33, %v339_v49  ;;  %v495_v4 = vmax.f32 %v457_v57, %v487_v1 }
  0xe5   : > { %v870_v34 = vpop.f32.mrf.mxu0 }
  0xe6   : > { %v481_v35 = vadd.f32 %v870_v34, %v364_v27  ;;  %v498_v61 = vmax.f32 %v468_v40, %v490_v50  ;;  %v488_v62 = vmul.f32 0.01, %v460_v51 }
  0xe7   : > { %v472_v37 = vpop.f32.mrf.mxu0 }
  0xe8   : > { %v473_v38 = vadd.f32 %v472_v37, %v354_v26  ;;  %v493_v42 = vmul.f32 0.01, %v481_v35  ;;  %v496_v2 = vmax.f32 %v460_v51, %v488_v62  ;;  %v512_v3 = vpack.c.bf16 %v498_v61, %v497_v0  ;;  %v536_v26 = vpop.permute.xlu0 %535 }
  0xe9   : > { %v871_v41 = vpop.f32.mrf.mxu0 }
  0xea   : > { %v484_v43 = vadd.f32 %v871_v41, %v369_v32  ;;  %v491_v46 = vmul.f32 0.01, %v473_v38  ;;  %v501_v52 = vmax.f32 %v481_v35, %v493_v42  ;;  %v511_v5 = vpack.c.bf16 %v496_v2, %v495_v4 }
  0xeb   : > { %v475_v45 = vpop.f32.mrf.mxu0 }
  0xec   : > { %v494_v47 = vmul.f32 0.01, %v484_v43  ;;  %v476_v48 = vadd.f32 %v475_v45, %v359_v30  ;;  %v499_v58 = vmax.f32 %v473_v38, %v491_v46  ;;  %v526_v41 = vpop.permute.xlu0 %525 }
  0xee   : > { %v502_v53 = vmax.f32 %v484_v43, %v494_v47  ;;  %v492_v54 = vmul.f32 0.01, %v476_v48 }
  0xf0   : > { %v500_v59 = vmax.f32 %v476_v48, %v492_v54  ;;  %v514_v60 = vpack.c.bf16 %v502_v53, %v501_v52  ;;  %v677_v54 = vld [vmem:[%s1137_s5] sm:$0x3]  ;;  %v686_v55 = vpop.permute.xlu0 %685 }
  0xf2   : > { %872 = vmatprep.subr.bf16.mxu1 %v514_v60  ;;  %v513_v63 = vpack.c.bf16 %v500_v59, %v499_v58 }
  0xf3   : > { %873 = vmatpush3.bf16.msra.mxu1 %v514_v60 }
  0xf4   : > { %874 = vmatprep.subr.bf16.mxu1 %v513_v63 }
  0xf7   : > { %875 = vmatpush3.bf16.msra.mxu1 %v513_v63 }
  0xf8   : > { %876 = vmatprep.subr.bf16.mxu1 %v512_v3 }
  0xfb   : > { %877 = vmatpush3.bf16.msra.mxu1 %v512_v3 }
  0xfc   : > { %878 = vmatprep.subr.bf16.mxu1 %v511_v5 }
  0xff   : > { %879 = vmatpush3.bf16.msra.mxu1 %v511_v5 }
 0x102   : > { %881 = vmatmul.mubr.msk.bf16.vlgmr.msra.gmra.mxu1 %vm583_vm1, %v938_v6 }
 0x103   : > { %884 = vmatprep.mubr.msk.bf16.mxu1 %vm583_vm1, %v939_v7 }
 0x10a   : > { %885 = vmatmul.mubr.msk.bf16.gmra.mxu1 %vm583_vm1, %v940_v8 }
 0x1c2   : > { %v882_v11 = vpop.f32.mrf.mxu1 }
 0x1c3   : > { %v639_v31 = vadd.f32 %v882_v11, %v536_v26 }
 0x1c4   : > { %v630_v13 = vpop.f32.mrf.mxu1 }
 0x1c5   : > { %v663_v42 = vmul.f32 0.01, %v639_v31  ;;  %v631_v43 = vadd.f32 %v630_v13, %v526_v41 }
 0x1c6   : > { %v883_v14 = vpop.f32.mrf.mxu1 }
 0x1c7   : > { %v642_v28 = vadd.f32 %v883_v14, %v541_v21  ;;  %v671_v48 = vmax.f32 %v639_v31, %v663_v42  ;;  %v661_v49 = vmul.f32 0.01, %v631_v43 }
 0x1c8   : > { %v633_v16 = vpop.f32.mrf.mxu1 }
 0x1c9   : > { %v664_v37 = vmul.f32 0.01, %v642_v28  ;;  %v634_v38 = vadd.f32 %v633_v16, %v531_v36  ;;  %v669_v52 = vmax.f32 %v631_v43, %v661_v49 }
 0x1ca   : > { %v886_v18 = vpop.f32.mrf.mxu1 }
 0x1cb   : > { %v655_v19 = vadd.f32 %v886_v18, %v556_v12  ;;  %v672_v45 = vmax.f32 %v642_v28, %v664_v37  ;;  %v662_v46 = vmul.f32 0.01, %v634_v38 }
 0x1cc   : > { %v646_v20 = vpop.f32.mrf.mxu1 }
 0x1cd   : > { %v667_v23 = vmul.f32 0.01, %v655_v19  ;;  %v647_v24 = vadd.f32 %v646_v20, %v546_v17  ;;  %v679_v50 = vpack.c.bf16 %v672_v45, %v671_v48  ;;  %v670_v51 = vmax.f32 %v634_v38, %v662_v46 }
 0x1ce   : > { %v887_v22 = vpop.f32.mrf.mxu1 }
 0x1cf   : > { %v658_v25 = vadd.f32 %v887_v22, %v561_v10  ;;  %v675_v32 = vmax.f32 %v655_v19, %v667_v23  ;;  %v665_v33 = vmul.f32 0.01, %v647_v24  ;;  %v678_v53 = vpack.c.bf16 %v670_v51, %v669_v52 }
 0x1d0   : > { %v649_v27 = vpop.f32.mrf.mxu1 }
 0x1d1   : > { %v668_v29 = vmul.f32 0.01, %v658_v25  ;;  %v650_v30 = vadd.f32 %v649_v27, %v551_v15  ;;  %v673_v44 = vmax.f32 %v647_v24, %v665_v33 }
 0x1d3   : > { %v676_v34 = vmax.f32 %v658_v25, %v668_v29  ;;  %v666_v35 = vmul.f32 0.01, %v650_v30 }
 0x1d5   : > { %v681_v39 = vpack.c.bf16 %v676_v34, %v675_v32  ;;  %v674_v40 = vmax.f32 %v650_v30, %v666_v35 }
 0x1d7   : > { %889 = vmatpush3.bf16.msra.mxu0 %v681_v39  ;;  %v680_v47 = vpack.c.bf16 %v674_v40, %v673_v44 }
 0x1d8   : > { %890 = vmatprep.subr.bf16.mxu0 %v966_v9 }
 0x1db   : > { %891 = vmatpush3.bf16.msra.mxu0 %v680_v47 }
 0x1dc   : > { %892 = vmatprep.subr.bf16.mxu0 %v966_v9 }
 0x1df   : > { %893 = vmatpush3.bf16.msra.mxu0 %v679_v50 }
 0x1e0   : > { %894 = vmatprep.subr.bf16.mxu0 %v966_v9 }
 0x1e3   : > { %895 = vmatpush3.bf16.msra.mxu0 %v678_v53 }
 0x1e6   : > { %897 = vmatmul.mubr.msk.bf16.vlgmr.msra.gmra.mxu0 %vm583_vm1, %v677_v54 }
 0x2a6   : > { %v725_v56 = vpop.f32.mrf.mxu0 }
 0x2a7   : > { %v726_v57 = vadd.f32 %v725_v56, %v686_v55 }
 0x2a8   : > { %v898_v58 = vpop.f32.mrf.mxu0 }
 0x2a9   : > { %731 = vst [vmem:[%s307_s30] sm:$0x7] %v726_v57 }
 0x2aa   : > { %v728_v59 = vpop.f32.mrf.mxu0 }
 0x2ac   : > { %v899_v60 = vpop.f32.mrf.mxu0 }
 0x2ad PF: > { %s17_s26 = sadd.s32 1, %s963_s26   ;;  %s1140_s24 = smov %s959_s25 }
 0x2ae   : > { %p14_p5 = scmp.ge.s32.totalorder %s17_s26, 4   ;;  %s1141_s25 = smov %s1143_s27 }
 0x2b0   :  { %16 = sbr.rel (!%p14_p5) target bundleno = 2 (0x2), region = 78 }

</bundles_post_ra>
